<compile_context>
chip_gen: v6e
topology: v6e:2x2x1
jax: 0.10.0
libtpu: 0.0.40
codegen_flags: <defaults>
</compile_context>

<pallas_src>
import jax
import jax.numpy as jnp
from jax.experimental import pallas as pl
from jax.experimental.pallas import tpu as pltpu

KH = KW = 3     # conv kernel
POOL = 3        # max-pool kernel & stride


def _conv_pool_relu_kernel(p_ref, w_ref, b_ref, o_ref):
    # p_ref: (POOL*POOL*M, KH*KW*Cin) bf16 im2col patches, window-element-major:
    #        row = k_pool*M + (n*PH*PW + i*PW + j),  col = (kh*KW + kw)*Cin + ci
    # w_ref: (KH*KW*Cin, Cout) bf16 flattened conv weights
    # b_ref: (1, Cout)         f32 conv bias
    # o_ref: (M, Cout)         f32 pooled + ReLU output, M = N*PH*PW
    m = o_ref.shape[0]
    # Single MXU pass over the whole batch; f32 accumulation, values stay in vregs.
    conv = jnp.dot(p_ref[...], w_ref[...], preferred_element_type=jnp.float32)
    # 3x3/stride-3 max-pool == elementwise max over the 9 contiguous M-row slabs
    # (slab boundaries are 32-row -> vreg-aligned, so slices are free selections).
    pooled = conv[0:m, :]
    for k in range(1, POOL * POOL):
        pooled = jnp.maximum(pooled, conv[k * m:(k + 1) * m, :])
    # Per-channel bias is constant within each pool window, so it commutes with the
    # max; add it once on the pooled block, then ReLU, then a single dense store.
    o_ref[...] = jnp.maximum(pooled + b_ref[...], 0.0).astype(o_ref.dtype)


@jax.jit
def my_net_forward(x_nchw, conv_w, conv_b):
    """Conv2d(3->6, 3x3, stride 1) -> MaxPool2d(3, stride 3, floor) -> ReLU."""
    N, Cin, H, W = x_nchw.shape
    Cout = conv_w.shape[0]
    OH, OW = H - KH + 1, W - KW + 1                            # conv output (VALID)
    PH, PW = (OH - POOL) // POOL + 1, (OW - POOL) // POOL + 1  # floor-mode pool output
    n_win = PH * PW
    m_rows = N * n_win
    k_dim = KH * KW * Cin

    # ---- gather-free, window-element-major im2col (static slices only) ----
    # Only the PH*POOL x PW*POOL conv positions consumed by the pool are built.
    x = jnp.transpose(x_nchw, (0, 2, 3, 1))                    # (N, H, W, Cin)
    slabs = []
    for kh in range(KH):
        for kw in range(KW):
            xs = x[:, kh:kh + PH * POOL, kw:kw + PW * POOL, :]  # (N, 12, 12, Cin)
            xs = xs.reshape(N, PH, POOL, PW, POOL, Cin)         # (n, i, pi, j, pj, ci)
            xs = jnp.transpose(xs, (2, 4, 0, 1, 3, 5))          # (pi, pj, n, i, j, ci)
            slabs.append(xs.reshape(POOL * POOL, m_rows, Cin))
    patches = jnp.concatenate(slabs, axis=-1)                   # (9, M, 27), cols (kh,kw,ci)
    patches = patches.reshape(POOL * POOL * m_rows, k_dim).astype(jnp.bfloat16)

    # PyTorch conv weight (Cout, Cin, KH, KW) -> (KH*KW*Cin, Cout), matching patch cols.
    w_mat = jnp.transpose(conv_w, (2, 3, 1, 0)).reshape(k_dim, Cout).astype(jnp.bfloat16)
    b_row = conv_b.reshape(1, Cout).astype(jnp.float32)

    out = pl.pallas_call(
        _conv_pool_relu_kernel,
        out_shape=jax.ShapeDtypeStruct((m_rows, Cout), jnp.float32),
        in_specs=[
            pl.BlockSpec(memory_space=pltpu.MemorySpace.VMEM),
            pl.BlockSpec(memory_space=pltpu.MemorySpace.VMEM),
            pl.BlockSpec(memory_space=pltpu.MemorySpace.VMEM),
        ],
        out_specs=pl.BlockSpec(memory_space=pltpu.MemorySpace.VMEM),
    )(patches, w_mat, b_row)

    out = out.reshape(N, PH, PW, Cout)                          # (N, PH, PW, Cout)
    return jnp.transpose(out, (0, 3, 1, 2))                     # NCHW: (N, Cout, PH, PW)


def reference_forward(x, w, b):
    conv = jax.lax.conv_general_dilated(
        x, w, window_strides=(1, 1), padding="VALID",
        dimension_numbers=("NCHW", "OIHW", "NCHW"),
        precision=jax.lax.Precision.HIGHEST,
    ) + b.reshape(1, -1, 1, 1)
    pooled = jax.lax.reduce_window(
        conv, -jnp.inf, jax.lax.max,
        window_dimensions=(1, 1, POOL, POOL),
        window_strides=(1, 1, POOL, POOL),
        padding="VALID",
    )
    return jnp.maximum(pooled, 0.0)


if __name__ == "__main__":
    key = jax.random.PRNGKey(0)
    kx, kwt, kb = jax.random.split(key, 3)
    # small shapes consistent with the module: batch=2, in_channels=3, spatial=16
    x = jax.random.normal(kx, (2, 3, 16, 16), dtype=jnp.float32)
    # deterministic synthetic parameters (shapes from nn.Conv2d(3, 6, (3,3)))
    conv_w = jax.random.normal(kwt, (6, 3, 3, 3), dtype=jnp.float32) * 0.1
    conv_b = jax.random.normal(kb, (6,), dtype=jnp.float32) * 0.1

    out = jax.block_until_ready(my_net_forward(x, conv_w, conv_b))

    # Strict check: the kernel feeds bf16 operands to the MXU with f32 accumulation,
    # so compare against the reference evaluated on bf16-rounded inputs (exact to
    # accumulation-order noise).
    rb = lambda a: a.astype(jnp.bfloat16).astype(jnp.float32)
    ref_bf16 = reference_forward(rb(x), rb(conv_w), conv_b)
    # Sanity check against the full-f32 reference (bounded by bf16 input rounding).
    ref_f32 = reference_forward(x, conv_w, conv_b)

    assert out.shape == ref_f32.shape == (2, 6, 4, 4), (out.shape, ref_f32.shape)
    assert jnp.allclose(out, ref_bf16, atol=1e-4, rtol=1e-4), float(
        jnp.max(jnp.abs(out - ref_bf16)))
    assert jnp.allclose(out, ref_f32, atol=2e-2, rtol=2e-2), float(
        jnp.max(jnp.abs(out - ref_f32)))
    print("KERNEL_OK")
</pallas_src>

<mosaic_0001>
module attributes {stable_mosaic.version = 11 : i64} {
  func.func @_conv_pool_relu_kernel(%arg0: memref<288x27xbf16, #tpu.memory_space<vmem>>, %arg1: memref<27x6xbf16, #tpu.memory_space<vmem>>, %arg2: memref<1x6xf32, #tpu.memory_space<vmem>>, %arg3: memref<32x6xf32, #tpu.memory_space<vmem>>) attributes {dimension_semantics = [], scalar_prefetch = 0 : i64, scratch_operands = 0 : i64, tpu.core_type = #tpu.core_type<tc>} {
    %c0 = arith.constant 0 : index
    %c0_0 = arith.constant 0 : index
    %0 = vector.load %arg0[%c0, %c0_0] : memref<288x27xbf16, #tpu.memory_space<vmem>>, vector<288x27xbf16>
    %c0_1 = arith.constant 0 : index
    %c0_2 = arith.constant 0 : index
    %1 = vector.load %arg1[%c0_1, %c0_2] : memref<27x6xbf16, #tpu.memory_space<vmem>>, vector<27x6xbf16>
    %cst = arith.constant dense<0.000000e+00> : vector<288x6xf32>
    %2 = tpu.matmul %0, %1, %cst {dimension_numbers = #tpu.dot_dimension_numbers<[1], [0], [0], [1], [0, 0, 1, 1], [], []>} : vector<288x27xbf16>, vector<27x6xbf16>, vector<288x6xf32> -> vector<288x6xf32>
    %3 = vector.extract_strided_slice %2 {offsets = [0, 0], sizes = [32, 6], strides = [1, 1]} : vector<288x6xf32> to vector<32x6xf32>
    %4 = vector.extract_strided_slice %2 {offsets = [32, 0], sizes = [32, 6], strides = [1, 1]} : vector<288x6xf32> to vector<32x6xf32>
    %5 = arith.maximumf %3, %4 : vector<32x6xf32>
    %6 = vector.extract_strided_slice %2 {offsets = [64, 0], sizes = [32, 6], strides = [1, 1]} : vector<288x6xf32> to vector<32x6xf32>
    %7 = arith.maximumf %5, %6 : vector<32x6xf32>
    %8 = vector.extract_strided_slice %2 {offsets = [96, 0], sizes = [32, 6], strides = [1, 1]} : vector<288x6xf32> to vector<32x6xf32>
    %9 = arith.maximumf %7, %8 : vector<32x6xf32>
    %10 = vector.extract_strided_slice %2 {offsets = [128, 0], sizes = [32, 6], strides = [1, 1]} : vector<288x6xf32> to vector<32x6xf32>
    %11 = arith.maximumf %9, %10 : vector<32x6xf32>
    %12 = vector.extract_strided_slice %2 {offsets = [160, 0], sizes = [32, 6], strides = [1, 1]} : vector<288x6xf32> to vector<32x6xf32>
    %13 = arith.maximumf %11, %12 : vector<32x6xf32>
    %14 = vector.extract_strided_slice %2 {offsets = [192, 0], sizes = [32, 6], strides = [1, 1]} : vector<288x6xf32> to vector<32x6xf32>
    %15 = arith.maximumf %13, %14 : vector<32x6xf32>
    %16 = vector.extract_strided_slice %2 {offsets = [224, 0], sizes = [32, 6], strides = [1, 1]} : vector<288x6xf32> to vector<32x6xf32>
    %17 = arith.maximumf %15, %16 : vector<32x6xf32>
    %18 = vector.extract_strided_slice %2 {offsets = [256, 0], sizes = [32, 6], strides = [1, 1]} : vector<288x6xf32> to vector<32x6xf32>
    %19 = arith.maximumf %17, %18 : vector<32x6xf32>
    %c0_3 = arith.constant 0 : index
    %c0_4 = arith.constant 0 : index
    %20 = vector.load %arg2[%c0_3, %c0_4] : memref<1x6xf32, #tpu.memory_space<vmem>>, vector<1x6xf32>
    %21 = vector.broadcast %20 : vector<1x6xf32> to vector<32x6xf32>
    %22 = arith.addf %19, %21 : vector<32x6xf32>
    %cst_5 = arith.constant 0.000000e+00 : f32
    %23 = vector.broadcast %cst_5 : f32 to vector<32x6xf32>
    %24 = arith.maximumf %22, %23 : vector<32x6xf32>
    %c0_6 = arith.constant 0 : index
    %c0_7 = arith.constant 0 : index
    %25 = vector.load %arg3[%c0_6, %c0_7] : memref<32x6xf32, #tpu.memory_space<vmem>>, vector<32x6xf32>
    tpu.vector_store %arg3[%c0_6, %c0_7], %24 {strides = array<i32>} : memref<32x6xf32, #tpu.memory_space<vmem>>, vector<32x6xf32>,
    return
  }
}

</mosaic_0001>

<bundles_post_ra>
// kernel: my_net_forward.1
= control target key start
LH: loop header
LB: loop body
LE: loop exit
PB: predicated region body
PF: predicated region fallthrough
CT: control target
= control target key end

     0   :  { %vm212_vm0 = vcmask 1044480   ;;  %vm213_vm1 = vcmask 1045504   ;;  %v613_v1 = vmov 65535   ;;  %vm157_vm2 = vcmask 220160   ;;  %s725_s0 = inlined_call_operand.vmem [shape: bf16[288,27], index: 0, kind: input, shape index: {}]   ;;  %s726_s1 = inlined_call_operand.vmem [shape: bf16[27,6], index: 1, kind: input, shape index: {}]   ;;  %s727_s2 = inlined_call_operand.vmem [shape: f32[1,6], index: 2, kind: input, shape index: {}]   ;;  %s728_s3 = inlined_call_operand.hbm [shape: f32[32,6], index: 3, kind: output, shape index: {}]  }
   0x1   :  { %v571_v0 = vld [vmem:[%s726_s1 + $0x8] sm:$0x3f]   ;;  %v214_v2 = vsel %vm212_vm0, 4294967295, %v613_v1  ;;  %v573_v3 = vld [vmem:[%s725_s0] sm:$0xff]   ;;  %v577_v7 = vld [vmem:[%s725_s0 + $0x50] sm:$0xff]  }
   0x2   :  { %v215_v4 = vsel %vm213_vm1, %v214_v2, 0  ;;  %v572_v6 = vld [vmem:[%s726_s1] sm:$0xff]   ;;  %527 = vmatprep.mubr.msk.bf16.mxu0 %vm157_vm2, %v573_v3  ;;  %v574_v8 = vld [vmem:[%s725_s0 + $0x8] sm:$0xff]   ;;  %v575_v9 = vld [vmem:[%s725_s0 + $0x10] sm:$0xff]   ;;  %547 = vmatprep.mubr.msk.bf16.mxu1 %vm157_vm2, %v577_v7 }
   0x3   :  { %v217_v5 = vand.u32 %v571_v0, %v215_v4  ;;  %v578_v10 = vld [vmem:[%s725_s0 + $0x58] sm:$0xff]   ;;  %v581_v11 = vld [vmem:[%s725_s0 + $0x60] sm:$0xff]   ;;  %v582_v14 = vld [vmem:[%s725_s0 + $0x68] sm:$0xff]  }
   0x4   :  { %v576_v12 = vld [vmem:[%s725_s0 + $0x18] sm:$0xff]   ;;  %v579_v13 = vld [vmem:[%s725_s0 + $0x20] sm:$0xff]   ;;  %v585_v15 = vld [vmem:[%s725_s0 + $0x70] sm:$0xff]  }
   0x5   :  { %523 = vmatprep.subr.bf16.mxu0 %v217_v5  ;;  %563 = vmatprep.subr.bf16.mxu1 %v217_v5 }
   0x6   :  { %524 = vmatpush3.bf16.msra.mxu0 %v217_v5  ;;  %565 = vmatpush3.bf16.msra.mxu1 %v217_v5 }
   0x7   :  { %525 = vmatprep.subr.bf16.mxu0 %v572_v6  ;;  %564 = vmatprep.subr.bf16.mxu1 %v572_v6 }
   0xa   :  { %526 = vmatpush3.bf16.msra.mxu0 %v572_v6  ;;  %566 = vmatpush3.bf16.msra.mxu1 %v572_v6 }
   0xd   :  { %528 = vmatmul.mubr.msk.bf16.vlgmr.msra.gmra.mxu0 %vm157_vm2, %v574_v8  ;;  %548 = vmatmul.mubr.msk.bf16.vlgmr.msra.gmra.mxu1 %vm157_vm2, %v578_v10 }
   0xe   :  { %531 = vmatprep.mubr.msk.bf16.mxu0 %vm157_vm2, %v575_v9  ;;  %551 = vmatprep.mubr.msk.bf16.mxu1 %vm157_vm2, %v581_v11 }
   0xf   :  { %8 = vsyncpa [#allocation3], 0  ;;  %v580_v16 = vld [vmem:[%s725_s0 + $0x28] sm:$0xff]   ;;  %v586_v17 = vld [vmem:[%s725_s0 + $0x78] sm:$0xff]   ;;  %vm443_vm3 = vcmask 48128  }
  0x10   :  { %v583_v18 = vld [vmem:[%s725_s0 + $0x30] sm:$0xff]   ;;  %v589_v19 = vld [vmem:[%s725_s0 + $0x80] sm:$0xff]   ;;  %v584_v20 = vld [vmem:[%s725_s0 + $0x38] sm:$0xff]  }
  0x11   :  { %v590_v21 = vld [vmem:[%s725_s0 + $0x88] sm:$0xff]   ;;  %v587_v22 = vld [vmem:[%s725_s0 + $0x40] sm:$0xff]  }
  0x12   :  { %v588_v23 = vld [vmem:[%s725_s0 + $0x48] sm:$0xff]  }
  0x15   :  { %532 = vmatmul.mubr.msk.bf16.gmra.mxu0 %vm157_vm2, %v576_v12  ;;  %552 = vmatmul.mubr.msk.bf16.gmra.mxu1 %vm157_vm2, %v582_v14 }
  0x16   :  { %535 = vmatprep.mubr.msk.bf16.mxu0 %vm157_vm2, %v579_v13  ;;  %555 = vmatprep.mubr.msk.bf16.mxu1 %vm157_vm2, %v585_v15 }
  0x1d   :  { %536 = vmatmul.mubr.msk.bf16.gmra.mxu0 %vm157_vm2, %v580_v16  ;;  %556 = vmatmul.mubr.msk.bf16.gmra.mxu1 %vm157_vm2, %v586_v17  ;;  %v502_v16 = vld [vmem:[%s727_s2] ss:$0 sm:$0xff]  ;;  %s614_s2 = smov [#allocation2]  }
  0x1e   :  { %539 = vmatprep.mubr.msk.bf16.mxu0 %vm157_vm2, %v583_v18  ;;  %559 = vmatprep.mubr.msk.bf16.mxu1 %vm157_vm2, %v589_v19  ;;  %s453_s24 = sshll.u32 %s614_s2, 4  ;;  %s454_s24 = int_to_ptr.vmem [resolvable:$true] %s453_s24 }
  0x1f   :  { %s591_s25 = scalar_lea.vmem %s454_s24, 512  ;;  %p596_p1 = scmp.lt.s32.totalorder %s454_s24, %s454_s24 }
  0x20   :  { %p592_p0 = scmp.ne.s32.totalorder %s454_s24, %s591_s25  ;;  %p597_p2 = scmp.lt.s32.totalorder %s591_s25, %s591_s25 }
  0x22   :  { %p598_p3 = por %p597_p2, %p596_p1 }
  0x24   :  { %p599_p4 = pnand %p598_p3, %p592_p0 }
  0x25   :  { %540 = vmatmul.mubr.msk.bf16.gmra.mxu0 %vm157_vm2, %v584_v20  ;;  %560 = vmatmul.mubr.msk.bf16.gmra.mxu1 %vm157_vm2, %v590_v21 }
  0x26   :  { %543 = vmatprep.mubr.msk.bf16.mxu0 %vm157_vm2, %v587_v22 }
  0x2d   :  { %544 = vmatmul.mubr.msk.bf16.gmra.mxu0 %vm157_vm2, %v588_v23 }
  0xcd   :  { %v529_v24 = vpop.f32.mrf.mxu0  ;;  %v549_v25 = vpop.f32.mrf.mxu1 }
  0xcf   :  { %v253_v26 = vpop.f32.mrf.mxu0  ;;  %v333_v27 = vpop.f32.mrf.mxu1 }
  0xd1   :  { %v530_v28 = vpop.f32.mrf.mxu0  ;;  %v550_v29 = vpop.f32.mrf.mxu1 }
  0xd3   :  { %v256_v30 = vpop.f32.mrf.mxu0  ;;  %v336_v31 = vpop.f32.mrf.mxu1 }
  0xd5   :  { %v533_v32 = vpop.f32.mrf.mxu0  ;;  %v553_v33 = vpop.f32.mrf.mxu1 }
  0xd6   :  { %v398_v49 = vmax.f32 %v529_v24, %v533_v32 }
  0xd7   :  { %v269_v34 = vpop.f32.mrf.mxu0  ;;  %v349_v35 = vpop.f32.mrf.mxu1 }
  0xd8   :  { %v396_v51 = vmax.f32 %v253_v26, %v269_v34 }
  0xd9   :  { %v534_v36 = vpop.f32.mrf.mxu0  ;;  %v554_v37 = vpop.f32.mrf.mxu1 }
  0xda   :  { %v399_v55 = vmax.f32 %v530_v28, %v534_v36 }
  0xdb   :  { %v272_v38 = vpop.f32.mrf.mxu0  ;;  %v352_v39 = vpop.f32.mrf.mxu1 }
  0xdc   :  { %v397_v59 = vmax.f32 %v256_v30, %v272_v38 }
  0xdd   :  { %v537_v40 = vpop.f32.mrf.mxu0  ;;  %v557_v42 = vpop.f32.mrf.mxu1 }
  0xde   :  { %v402_v52 = vmax.f32 %v398_v49, %v537_v40 }
  0xdf   :  { %v285_v41 = vpop.f32.mrf.mxu0  ;;  %v365_v45 = vpop.f32.mrf.mxu1 }
  0xe0   :  { %v400_v56 = vmax.f32 %v396_v51, %v285_v41 }
  0xe1   :  { %v538_v43 = vpop.f32.mrf.mxu0  ;;  %v558_v48 = vpop.f32.mrf.mxu1 }
  0xe2   :  { %v403_v60 = vmax.f32 %v399_v55, %v538_v43 }
  0xe3   :  { %v288_v44 = vpop.f32.mrf.mxu0  ;;  %v368_v54 = vpop.f32.mrf.mxu1 }
  0xe4   :  { %v401_v1 = vmax.f32 %v397_v59, %v288_v44 }
  0xe5   :  { %v541_v46 = vpop.f32.mrf.mxu0  ;;  %v561_v0 = vpop.f32.mrf.mxu1 }
  0xe6   :  { %v406_v57 = vmax.f32 %v402_v52, %v541_v46 }
  0xe7   :  { %v301_v47 = vpop.f32.mrf.mxu0  ;;  %v381_v10 = vpop.f32.mrf.mxu1 }
  0xe8   :  { %v404_v61 = vmax.f32 %v400_v56, %v301_v47 }
  0xe9   :  { %v542_v50 = vpop.f32.mrf.mxu0  ;;  %v562_v21 = vpop.f32.mrf.mxu1 }
  0xea   :  { %v407_v2 = vmax.f32 %v403_v60, %v542_v50 }
  0xeb   :  { %v304_v53 = vpop.f32.mrf.mxu0  ;;  %v384_v30 = vpop.f32.mrf.mxu1 }
  0xec   :  { %v405_v6 = vmax.f32 %v401_v1, %v304_v53 }
  0xed   :  { %v545_v58 = vpop.f32.mrf.mxu0 }
  0xee   :  { %v410_v62 = vmax.f32 %v406_v57, %v545_v58 }
  0xef   :  { %v317_v63 = vpop.f32.mrf.mxu0 }
  0xf0   :  { %v414_v3 = vmax.f32 %v410_v62, %v549_v25  ;;  %v408_v4 = vmax.f32 %v404_v61, %v317_v63 }
  0xf1   :  { %v546_v5 = vpop.f32.mrf.mxu0 }
  0xf2   :  { %v412_v7 = vmax.f32 %v408_v4, %v333_v27  ;;  %v418_v8 = vmax.f32 %v414_v3, %v553_v33  ;;  %v411_v9 = vmax.f32 %v407_v2, %v546_v5 }
  0xf3   :  { %v320_v11 = vpop.f32.mrf.mxu0 }
  0xf4   :  { %v422_v12 = vmax.f32 %v418_v8, %v557_v42  ;;  %v415_v13 = vmax.f32 %v411_v9, %v550_v29  ;;  %v416_v14 = vmax.f32 %v412_v7, %v349_v35  ;;  %v409_v15 = vmax.f32 %v405_v6, %v320_v11 }
  0xf6   :  { %v426_v17 = vmax.f32 %v422_v12, %v561_v0  ;;  %v420_v18 = vmax.f32 %v416_v14, %v365_v45  ;;  %v413_v19 = vmax.f32 %v409_v15, %v336_v31  ;;  %v419_v20 = vmax.f32 %v415_v13, %v554_v37 }
  0xf8   :  { %v437_v22 = vadd.f32 %v502_v16, %v426_v17  ;;  %v424_v23 = vmax.f32 %v420_v18, %v381_v10  ;;  %v423_v24 = vmax.f32 %v419_v20, %v558_v48  ;;  %v417_v25 = vmax.f32 %v413_v19, %v352_v39 }
  0xfa   :  { %v441_v26 = vmax.f32 %v437_v22, 0.0  ;;  %v435_v27 = vadd.f32 %v502_v16, %v424_v23  ;;  %v427_v28 = vmax.f32 %v423_v24, %v562_v21  ;;  %v421_v29 = vmax.f32 %v417_v25, %v368_v54 }
  0xfc   :  { %446 = vst.msk [vmem:[#allocation2 + $0x10] sm:$0xff] %vm443_vm3, %v441_v26  ;;  %v439_v32 = vmax.f32 %v435_v27, 0.0  ;;  %v438_v33 = vadd.f32 %v502_v16, %v427_v28  ;;  %v425_v34 = vmax.f32 %v421_v29, %v384_v30 }
  0xfe   :  { %444 = vst.msk [vmem:[#allocation2] sm:$0xff] %vm443_vm3, %v439_v32  ;;  %v442_v31 = vmax.f32 %v438_v33, 0.0  ;;  %v436_v35 = vadd.f32 %v502_v16, %v425_v34 }
 0x100   :  { %447 = vst.msk [vmem:[#allocation2 + $0x18] sm:$0xff] %vm443_vm3, %v442_v31  ;;  %v440_v36 = vmax.f32 %v436_v35, 0.0 }
 0x102   :  { %445 = vst.msk [vmem:[#allocation2 + $0x8] sm:$0xff] %vm443_vm3, %v440_v36 }
 0x103   :  { %602 = shalt.err (!%p599_p4)
}
 0x104   :  { %s615_s26 = smov 128   ;;  %s616_s27 = smov 8  }
 0x105   :  { %459 = dma.vmem_to_hbm [thread:$0]  %s454_s24, 512, %s728_s3, [#allocation3], %s615_s26, %s615_s26, %s616_s27  }
 0x106   :  { %611 = dma.done.wait [#allocation3], 512  }
 0x107   :  { %612 = vsyncadd [#allocation3], 4294966784 }
 0x108   :  { %463 = vsyncpa [#allocation3], 1 }

</bundles_post_ra>
